<compile_context>
chip_gen: v7x
topology: tpu7x:2x2x1
jax: 0.10.0
libtpu: 0.0.40
codegen_flags: <defaults>
</compile_context>

<pallas_src>
import functools

import jax
import jax.numpy as jnp
from jax.experimental import pallas as pl
from jax.experimental.pallas import tpu as pltpu


def _cdiv(a, b):
    return -(-a // b)


def _round_up(x, m):
    return _cdiv(x, m) * m


def _dice_sums_kernel(logits_ref, tgt_ref, acc_ref, *, num_classes, ignore_index):
    """Per-(batch, core-split, row-tile) hot path.

    logits_ref : (1, C, TR, 128)   one dense (TR, 128) slab per class
    tgt_ref    : (1, 1, TR, 128)   int32 targets
    acc_ref    : (1, 1, 2, C, 128) lane-dense partial sums, resident in VMEM
                 across the row-tile (reduction) grid axis.
                 [0] = intersection partials, [1] = denominator partials.
    """
    k = pl.program_id(2)

    @pl.when(k == 0)
    def _():
        acc_ref[...] = jnp.zeros_like(acc_ref)

    tgt = tgt_ref[0, 0]                                   # (TR, 128) int32
    valid = tgt != ignore_index                           # (TR, 128) bool
    validf = valid.astype(jnp.float32)

    # Single up-cast per tile; all in-kernel math in f32 (v5e has no bf16 VPU/EUP).
    slabs = [logits_ref[0, cc].astype(jnp.float32) for cc in range(num_classes)]

    # Numerically-stable softmax over classes, fully unrolled: the class-axis
    # max/sum are C-1 elementwise VPU ops on dense (TR, 128) slabs (no XLU).
    m = slabs[0]
    for cc in range(1, num_classes):
        m = jnp.maximum(m, slabs[cc])
    exps = [jnp.exp(s - m) for s in slabs]
    z = exps[0]
    for cc in range(1, num_classes):
        z = z + exps[cc]

    # EUP approx reciprocal + one Newton step (f32-accurate), mask folded once.
    inv = pl.reciprocal(z, approx=True)
    inv = inv * (2.0 - z * inv)
    inv = inv * validf

    inter_rows = []
    denom_rows = []
    for cc in range(num_classes):
        p = exps[cc] * inv                                           # masked probs
        oh = jnp.where(jnp.logical_and(valid, tgt == cc), 1.0, 0.0)  # masked one-hot
        # Per-tile sublane reductions -> (1, 128) lane rows; keeps accumulator
        # traffic independent of the tile size.
        inter_rows.append(jnp.sum(p * oh, axis=0, keepdims=True))
        denom_rows.append(jnp.sum(p + oh, axis=0, keepdims=True))

    acc_ref[0, 0, 0] += jnp.concatenate(inter_rows, axis=0)          # (C, 128)
    acc_ref[0, 0, 1] += jnp.concatenate(denom_rows, axis=0)          # (C, 128)


def dice_loss(outputs, targets, *, smooth=1.0, ignore_index=-1):
    """Pallas implementation of DiceLoss.forward(outputs, targets).

    outputs: (N, C, H, W) float32 or bfloat16 logits (fed directly, no cast)
    targets: (N, H, W) integer labels, ignore_index pixels are dropped.
    """
    n, c, h, w = outputs.shape
    hw = h * w

    logits = outputs.reshape(n, c, hw)          # free reshape (merge trailing dims)
    tgt = targets.reshape(n, hw).astype(jnp.int32)

    # ---- generation-aware VMEM budget -> row-tile size --------------------
    cap = 64 << 20                               # conservative fallback (v7x)
    try:
        cap = int(getattr(pltpu.get_tpu_info(), "vmem_capacity_bytes", cap))
    except Exception:
        pass
    # ~48 MiB on 128-MiB chips (v5e/v6e), ~24 MiB on 64-MiB chips (v7x).
    budget = max(16 << 20, min((cap * 3) // 8, 64 << 20))

    in_bytes = jnp.dtype(outputs.dtype).itemsize
    # Per row of 128 pixels: double-buffered logits + targets blocks plus a
    # generous allowance for the f32 in-kernel temporaries.
    bytes_per_row = 128 * (2 * c * in_bytes + 2 * 4 + 4 * (2 * c + 6))
    tr_budget = max(8, min(4096, (budget // bytes_per_row) // 8 * 8))

    r_raw = _cdiv(hw, 128)                       # rows of 128 pixels
    nt0 = _cdiv(r_raw, tr_budget)                # row tiles needed
    split = 2 if nt0 >= 2 else 1                 # 2-way pixel split for v7x megacore
    nt = _round_up(nt0, split)
    if nt == 1:
        tr = r_raw                               # full extent (allowed even if %8 != 0)
    else:
        tr = _round_up(_cdiv(r_raw, nt), 8)
    r_pad = nt * tr
    hw_pad = r_pad * 128

    if hw_pad != hw:
        # Padded pixels get ignore_index -> contribute nothing; logits padded
        # with 0 stay finite through exp. Only a few rows, only when ragged.
        logits = jnp.pad(logits, ((0, 0), (0, 0), (0, hw_pad - hw)))
        tgt = jnp.pad(tgt, ((0, 0), (0, hw_pad - hw)), constant_values=ignore_index)

    logits = logits.reshape(n, c, r_pad, 128)    # dense (rows, lanes) layout
    tgt = tgt.reshape(n, 1, r_pad, 128)

    nt_s = nt // split
    grid = (n, split, nt_s)

    sums = pl.pallas_call(
        functools.partial(_dice_sums_kernel, num_classes=c,
                          ignore_index=ignore_index),
        out_shape=jax.ShapeDtypeStruct((n, split, 2, c, 128), jnp.float32),
        grid_spec=pltpu.PrefetchScalarGridSpec(
            num_scalar_prefetch=0,
            grid=grid,
            in_specs=[
                pl.BlockSpec((1, c, tr, 128),
                             lambda i, s, k: (i, 0, s * nt_s + k, 0)),
                pl.BlockSpec((1, 1, tr, 128),
                             lambda i, s, k: (i, 0, s * nt_s + k, 0)),
            ],
            out_specs=pl.BlockSpec((1, 1, 2, c, 128),
                                   lambda i, s, k: (i, s, 0, 0, 0)),
        ),
        compiler_params=pltpu.CompilerParams(
            # batch and pixel-split parallel (v7x 2 TCs), row-tile reduction arbitrary
            dimension_semantics=("parallel", "parallel", "arbitrary"),
            vmem_limit_bytes=int(min((cap * 3) // 4, 2 * budget + (16 << 20))),
        ),
    )(logits, tgt)

    # Tiny O(N*2*C*128) epilogue in plain JAX.
    totals = jnp.sum(sums, axis=(0, 1, 4))       # (2, C)
    intersection = totals[0]
    dice_denominator = totals[1]                 # sum(probs) + sum(onehot)
    dice_score = (2.0 * intersection + smooth) / (dice_denominator + smooth)
    return 1.0 - jnp.mean(dice_score)


def _reference_dice_loss(outputs, targets, smooth=1.0, ignore_index=-1):
    """Pure-JAX reference mirroring the PyTorch forward."""
    n, c, h, w = outputs.shape
    logits = jnp.transpose(outputs, (0, 2, 3, 1)).reshape(-1, c)
    tgt = targets.reshape(-1)
    mask = (tgt != ignore_index).astype(jnp.float32)[:, None]
    probs = jax.nn.softmax(logits, axis=1) * mask
    onehot = jax.nn.one_hot(jnp.clip(tgt, 0, c - 1), c, dtype=jnp.float32) * mask
    inter = jnp.sum(probs * onehot, axis=0)
    denom = jnp.sum(probs, axis=0) + jnp.sum(onehot, axis=0)
    score = (2.0 * inter + smooth) / (denom + smooth)
    return 1.0 - jnp.mean(score)


if __name__ == "__main__":
    key = jax.random.PRNGKey(0)
    k_out, k_tgt = jax.random.split(key)

    N, C, H, W = 2, 4, 16, 16
    outputs = jax.random.normal(k_out, (N, C, H, W), dtype=jnp.float32)
    # targets in [-1, C-1]: includes ignore_index = -1 pixels
    targets = jax.random.randint(k_tgt, (N, H, W), minval=-1, maxval=C,
                                 dtype=jnp.int32)

    loss = jax.block_until_ready(dice_loss(outputs, targets,
                                           smooth=1.0, ignore_index=-1))
    ref = jax.block_until_ready(_reference_dice_loss(outputs, targets))
    assert jnp.allclose(loss, ref, atol=1e-4, rtol=1e-4), (loss, ref)

    print("KERNEL_OK")
</pallas_src>

<mosaic_0001>
module attributes {stable_mosaic.version = 11 : i64} {
  func.func @_dice_sums_kernel(%arg0: i32, %arg1: i32, %arg2: i32, %arg3: memref<1x4x2x128xf32, #tpu.memory_space<vmem>>, %arg4: memref<1x1x2x128xi32, #tpu.memory_space<vmem>>, %arg5: memref<1x1x2x4x128xf32, #tpu.memory_space<vmem>>) attributes {dimension_semantics = [#tpu.dimension_semantics<parallel>, #tpu.dimension_semantics<parallel>, #tpu.dimension_semantics<arbitrary>], iteration_bounds = array<i64: 2, 1, 1>, scalar_prefetch = 0 : i64, scratch_operands = 0 : i64, tpu.core_type = #tpu.core_type<tc>, window_params = [{transform_indices = @transform_0, window_bounds = array<i64: 1, 4, 2, 128>}, {transform_indices = @transform_1, window_bounds = array<i64: 1, 1, 2, 128>}, {transform_indices = @transform_2, window_bounds = array<i64: 1, 1, 2, 4, 128>}]} {
    %c0_i32 = arith.constant 0 : i32
    %0 = arith.cmpi eq, %arg2, %c0_i32 : i32
    %1 = arith.extui %0 : i1 to i32
    %c0_i32_0 = arith.constant 0 : i32
    %2 = arith.cmpi ne, %1, %c0_i32_0 : i32
    scf.if %2 {
      %cst_54 = arith.constant 0.000000e+00 : f32
      %103 = vector.broadcast %cst_54 : f32 to vector<1x1x2x4x128xf32>
      %c0_55 = arith.constant 0 : index
      %c0_56 = arith.constant 0 : index
      %c0_57 = arith.constant 0 : index
      %c0_58 = arith.constant 0 : index
      %c0_59 = arith.constant 0 : index
      %104 = vector.load %arg5[%c0_55, %c0_56, %c0_57, %c0_58, %c0_59] : memref<1x1x2x4x128xf32, #tpu.memory_space<vmem>>, vector<1x1x2x4x128xf32>
      tpu.vector_store %arg5[%c0_55, %c0_56, %c0_57, %c0_58, %c0_59], %103 {strides = array<i32>} : memref<1x1x2x4x128xf32, #tpu.memory_space<vmem>>, vector<1x1x2x4x128xf32>,
    } else {
    }
    %c0 = arith.constant 0 : index
    %c0_1 = arith.constant 0 : index
    %c0_2 = arith.constant 0 : index
    %c0_3 = arith.constant 0 : index
    %3 = vector.load %arg4[%c0, %c0_1, %c0_2, %c0_3] : memref<1x1x2x128xi32, #tpu.memory_space<vmem>>, vector<1x1x2x128xi32>
    %4 = vector.shape_cast %3 : vector<1x1x2x128xi32> to vector<2x128xi32>
    %c-1_i32 = arith.constant -1 : i32
    %5 = vector.broadcast %c-1_i32 : i32 to vector<2x128xi32>
    %6 = arith.cmpi ne, %4, %5 : vector<2x128xi32>
    %7 = arith.extui %6 : vector<2x128xi1> to vector<2x128xi32>
    %8 = arith.sitofp %7 : vector<2x128xi32> to vector<2x128xf32>
    %c0_4 = arith.constant 0 : index
    %c0_5 = arith.constant 0 : index
    %c0_6 = arith.constant 0 : index
    %c0_7 = arith.constant 0 : index
    %9 = vector.load %arg3[%c0_4, %c0_5, %c0_6, %c0_7] : memref<1x4x2x128xf32, #tpu.memory_space<vmem>>, vector<1x1x2x128xf32>
    %10 = vector.shape_cast %9 : vector<1x1x2x128xf32> to vector<2x128xf32>
    %c0_8 = arith.constant 0 : index
    %c1 = arith.constant 1 : index
    %c0_9 = arith.constant 0 : index
    %c0_10 = arith.constant 0 : index
    %11 = vector.load %arg3[%c0_8, %c1, %c0_9, %c0_10] : memref<1x4x2x128xf32, #tpu.memory_space<vmem>>, vector<1x1x2x128xf32>
    %12 = vector.shape_cast %11 : vector<1x1x2x128xf32> to vector<2x128xf32>
    %c0_11 = arith.constant 0 : index
    %c2 = arith.constant 2 : index
    %c0_12 = arith.constant 0 : index
    %c0_13 = arith.constant 0 : index
    %13 = vector.load %arg3[%c0_11, %c2, %c0_12, %c0_13] : memref<1x4x2x128xf32, #tpu.memory_space<vmem>>, vector<1x1x2x128xf32>
    %14 = vector.shape_cast %13 : vector<1x1x2x128xf32> to vector<2x128xf32>
    %c0_14 = arith.constant 0 : index
    %c3 = arith.constant 3 : index
    %c0_15 = arith.constant 0 : index
    %c0_16 = arith.constant 0 : index
    %15 = vector.load %arg3[%c0_14, %c3, %c0_15, %c0_16] : memref<1x4x2x128xf32, #tpu.memory_space<vmem>>, vector<1x1x2x128xf32>
    %16 = vector.shape_cast %15 : vector<1x1x2x128xf32> to vector<2x128xf32>
    %17 = arith.maximumf %10, %12 : vector<2x128xf32>
    %18 = arith.maximumf %17, %14 : vector<2x128xf32>
    %19 = arith.maximumf %18, %16 : vector<2x128xf32>
    %20 = arith.subf %10, %19 : vector<2x128xf32>
    %21 = math.exp %20 : vector<2x128xf32>
    %22 = arith.subf %12, %19 : vector<2x128xf32>
    %23 = math.exp %22 : vector<2x128xf32>
    %24 = arith.subf %14, %19 : vector<2x128xf32>
    %25 = math.exp %24 : vector<2x128xf32>
    %26 = arith.subf %16, %19 : vector<2x128xf32>
    %27 = math.exp %26 : vector<2x128xf32>
    %28 = arith.addf %21, %23 : vector<2x128xf32>
    %29 = arith.addf %28, %25 : vector<2x128xf32>
    %30 = arith.addf %29, %27 : vector<2x128xf32>
    %31 = tpu.reciprocal %30 {approx = true} : vector<2x128xf32> -> vector<2x128xf32>
    %32 = arith.mulf %30, %31 : vector<2x128xf32>
    %cst = arith.constant 2.000000e+00 : f32
    %33 = vector.broadcast %cst : f32 to vector<2x128xf32>
    %34 = arith.subf %33, %32 : vector<2x128xf32>
    %35 = arith.mulf %31, %34 : vector<2x128xf32>
    %36 = arith.mulf %35, %8 : vector<2x128xf32>
    %37 = arith.mulf %21, %36 : vector<2x128xf32>
    %c0_i32_17 = arith.constant 0 : i32
    %38 = vector.broadcast %c0_i32_17 : i32 to vector<2x128xi32>
    %39 = arith.cmpi eq, %4, %38 : vector<2x128xi32>
    %40 = arith.andi %6, %39 : vector<2x128xi1>
    %cst_18 = arith.constant 1.000000e+00 : f32
    %cst_19 = arith.constant 0.000000e+00 : f32
    %41 = vector.broadcast %cst_18 : f32 to vector<2x128xf32>
    %42 = vector.broadcast %cst_19 : f32 to vector<2x128xf32>
    %43 = arith.select %40, %41, %42 : vector<2x128xi1>, vector<2x128xf32>
    %44 = arith.mulf %37, %43 : vector<2x128xf32>
    %cst_20 = arith.constant dense<0.000000e+00> : vector<128xf32>
    %45 = vector.multi_reduction <add>, %44, %cst_20 [0] : vector<2x128xf32> to vector<128xf32>
    %46 = vector.shape_cast %45 : vector<128xf32> to vector<1x128xf32>
    %47 = arith.addf %37, %43 : vector<2x128xf32>
    %cst_21 = arith.constant dense<0.000000e+00> : vector<128xf32>
    %48 = vector.multi_reduction <add>, %47, %cst_21 [0] : vector<2x128xf32> to vector<128xf32>
    %49 = vector.shape_cast %48 : vector<128xf32> to vector<1x128xf32>
    %50 = arith.mulf %23, %36 : vector<2x128xf32>
    %c1_i32 = arith.constant 1 : i32
    %51 = vector.broadcast %c1_i32 : i32 to vector<2x128xi32>
    %52 = arith.cmpi eq, %4, %51 : vector<2x128xi32>
    %53 = arith.andi %6, %52 : vector<2x128xi1>
    %cst_22 = arith.constant 1.000000e+00 : f32
    %cst_23 = arith.constant 0.000000e+00 : f32
    %54 = vector.broadcast %cst_22 : f32 to vector<2x128xf32>
    %55 = vector.broadcast %cst_23 : f32 to vector<2x128xf32>
    %56 = arith.select %53, %54, %55 : vector<2x128xi1>, vector<2x128xf32>
    %57 = arith.mulf %50, %56 : vector<2x128xf32>
    %cst_24 = arith.constant dense<0.000000e+00> : vector<128xf32>
    %58 = vector.multi_reduction <add>, %57, %cst_24 [0] : vector<2x128xf32> to vector<128xf32>
    %59 = vector.shape_cast %58 : vector<128xf32> to vector<1x128xf32>
    %60 = arith.addf %50, %56 : vector<2x128xf32>
    %cst_25 = arith.constant dense<0.000000e+00> : vector<128xf32>
    %61 = vector.multi_reduction <add>, %60, %cst_25 [0] : vector<2x128xf32> to vector<128xf32>
    %62 = vector.shape_cast %61 : vector<128xf32> to vector<1x128xf32>
    %63 = arith.mulf %25, %36 : vector<2x128xf32>
    %c2_i32 = arith.constant 2 : i32
    %64 = vector.broadcast %c2_i32 : i32 to vector<2x128xi32>
    %65 = arith.cmpi eq, %4, %64 : vector<2x128xi32>
    %66 = arith.andi %6, %65 : vector<2x128xi1>
    %cst_26 = arith.constant 1.000000e+00 : f32
    %cst_27 = arith.constant 0.000000e+00 : f32
    %67 = vector.broadcast %cst_26 : f32 to vector<2x128xf32>
    %68 = vector.broadcast %cst_27 : f32 to vector<2x128xf32>
    %69 = arith.select %66, %67, %68 : vector<2x128xi1>, vector<2x128xf32>
    %70 = arith.mulf %63, %69 : vector<2x128xf32>
    %cst_28 = arith.constant dense<0.000000e+00> : vector<128xf32>
    %71 = vector.multi_reduction <add>, %70, %cst_28 [0] : vector<2x128xf32> to vector<128xf32>
    %72 = vector.shape_cast %71 : vector<128xf32> to vector<1x128xf32>
    %73 = arith.addf %63, %69 : vector<2x128xf32>
    %cst_29 = arith.constant dense<0.000000e+00> : vector<128xf32>
    %74 = vector.multi_reduction <add>, %73, %cst_29 [0] : vector<2x128xf32> to vector<128xf32>
    %75 = vector.shape_cast %74 : vector<128xf32> to vector<1x128xf32>
    %76 = arith.mulf %27, %36 : vector<2x128xf32>
    %c3_i32 = arith.constant 3 : i32
    %77 = vector.broadcast %c3_i32 : i32 to vector<2x128xi32>
    %78 = arith.cmpi eq, %4, %77 : vector<2x128xi32>
    %79 = arith.andi %6, %78 : vector<2x128xi1>
    %cst_30 = arith.constant 1.000000e+00 : f32
    %cst_31 = arith.constant 0.000000e+00 : f32
    %80 = vector.broadcast %cst_30 : f32 to vector<2x128xf32>
    %81 = vector.broadcast %cst_31 : f32 to vector<2x128xf32>
    %82 = arith.select %79, %80, %81 : vector<2x128xi1>, vector<2x128xf32>
    %83 = arith.mulf %76, %82 : vector<2x128xf32>
    %cst_32 = arith.constant dense<0.000000e+00> : vector<128xf32>
    %84 = vector.multi_reduction <add>, %83, %cst_32 [0] : vector<2x128xf32> to vector<128xf32>
    %85 = vector.shape_cast %84 : vector<128xf32> to vector<1x128xf32>
    %86 = arith.addf %76, %82 : vector<2x128xf32>
    %cst_33 = arith.constant dense<0.000000e+00> : vector<128xf32>
    %87 = vector.multi_reduction <add>, %86, %cst_33 [0] : vector<2x128xf32> to vector<128xf32>
    %88 = vector.shape_cast %87 : vector<128xf32> to vector<1x128xf32>
    %c0_34 = arith.constant 0 : index
    %c0_35 = arith.constant 0 : index
    %c0_36 = arith.constant 0 : index
    %c0_37 = arith.constant 0 : index
    %c0_38 = arith.constant 0 : index
    %89 = vector.load %arg5[%c0_34, %c0_35, %c0_36, %c0_37, %c0_38] : memref<1x1x2x4x128xf32, #tpu.memory_space<vmem>>, vector<1x1x1x4x128xf32>
    %90 = vector.shape_cast %89 : vector<1x1x1x4x128xf32> to vector<4x128xf32>
    %91 = tpu.concatenate %46, %59, %72, %85 in 0 : vector<1x128xf32>, vector<1x128xf32>, vector<1x128xf32>, vector<1x128xf32> -> vector<4x128xf32>
    %92 = arith.addf %90, %91 : vector<4x128xf32>
    %c0_39 = arith.constant 0 : index
    %c0_40 = arith.constant 0 : index
    %c0_41 = arith.constant 0 : index
    %c0_42 = arith.constant 0 : index
    %c0_43 = arith.constant 0 : index
    %93 = vector.load %arg5[%c0_39, %c0_40, %c0_41, %c0_42, %c0_43] : memref<1x1x2x4x128xf32, #tpu.memory_space<vmem>>, vector<1x1x1x4x128xf32>
    %94 = vector.shape_cast %93 : vector<1x1x1x4x128xf32> to vector<4x128xf32>
    %95 = vector.shape_cast %92 : vector<4x128xf32> to vector<1x1x1x4x128xf32>
    tpu.vector_store %arg5[%c0_39, %c0_40, %c0_41, %c0_42, %c0_43], %95 {strides = array<i32>} : memref<1x1x2x4x128xf32, #tpu.memory_space<vmem>>, vector<1x1x1x4x128xf32>,
    %c0_44 = arith.constant 0 : index
    %c0_45 = arith.constant 0 : index
    %c1_46 = arith.constant 1 : index
    %c0_47 = arith.constant 0 : index
    %c0_48 = arith.constant 0 : index
    %96 = vector.load %arg5[%c0_44, %c0_45, %c1_46, %c0_47, %c0_48] : memref<1x1x2x4x128xf32, #tpu.memory_space<vmem>>, vector<1x1x1x4x128xf32>
    %97 = vector.shape_cast %96 : vector<1x1x1x4x128xf32> to vector<4x128xf32>
    %98 = tpu.concatenate %49, %62, %75, %88 in 0 : vector<1x128xf32>, vector<1x128xf32>, vector<1x128xf32>, vector<1x128xf32> -> vector<4x128xf32>
    %99 = arith.addf %97, %98 : vector<4x128xf32>
    %c0_49 = arith.constant 0 : index
    %c0_50 = arith.constant 0 : index
    %c1_51 = arith.constant 1 : index
    %c0_52 = arith.constant 0 : index
    %c0_53 = arith.constant 0 : index
    %100 = vector.load %arg5[%c0_49, %c0_50, %c1_51, %c0_52, %c0_53] : memref<1x1x2x4x128xf32, #tpu.memory_space<vmem>>, vector<1x1x1x4x128xf32>
    %101 = vector.shape_cast %100 : vector<1x1x1x4x128xf32> to vector<4x128xf32>
    %102 = vector.shape_cast %99 : vector<4x128xf32> to vector<1x1x1x4x128xf32>
    tpu.vector_store %arg5[%c0_49, %c0_50, %c1_51, %c0_52, %c0_53], %102 {strides = array<i32>} : memref<1x1x2x4x128xf32, #tpu.memory_space<vmem>>, vector<1x1x1x4x128xf32>,
    return
  }
  func.func @transform_0(%arg0: i32, %arg1: i32, %arg2: i32) -> (i32, i32, i32, i32) {
    %c1_i32 = arith.constant 1 : i32
    %0 = arith.muli %arg1, %c1_i32 : i32
    %1 = arith.addi %0, %arg2 : i32
    %c0_i32 = arith.constant 0 : i32
    %c0_i32_0 = arith.constant 0 : i32
    %c0_i32_1 = arith.constant 0 : i32
    return %arg0, %c0_i32, %1, %c0_i32_0 : i32, i32, i32, i32
  }
  func.func @transform_1(%arg0: i32, %arg1: i32, %arg2: i32) -> (i32, i32, i32, i32) {
    %c1_i32 = arith.constant 1 : i32
    %0 = arith.muli %arg1, %c1_i32 : i32
    %1 = arith.addi %0, %arg2 : i32
    %c0_i32 = arith.constant 0 : i32
    %c0_i32_0 = arith.constant 0 : i32
    %c0_i32_1 = arith.constant 0 : i32
    return %arg0, %c0_i32, %1, %c0_i32_0 : i32, i32, i32, i32
  }
  func.func @transform_2(%arg0: i32, %arg1: i32, %arg2: i32) -> (i32, i32, i32, i32, i32) {
    %c0_i32 = arith.constant 0 : i32
    %c0_i32_0 = arith.constant 0 : i32
    %c0_i32_1 = arith.constant 0 : i32
    %c0_i32_2 = arith.constant 0 : i32
    return %arg0, %arg1, %c0_i32, %c0_i32_0, %c0_i32_1 : i32, i32, i32, i32, i32
  }
}

</mosaic_0001>

<bundles_post_ra>
// kernel: tpu_custom_call.1
= control target key start
LH: loop header
LB: loop body
LE: loop exit
PB: predicated region body
PF: predicated region fallthrough
CT: control target
= control target key end

     0   :  { %7 = vsyncpa [#allocation3], 0  ;;  %s1023_s0 = inlined_call_operand.hbm [shape: f32[2,4,2,128], index: 0, kind: input, shape index: {}]   ;;  %s1024_s1 = inlined_call_operand.hbm [shape: s32[2,1,2,128], index: 1, kind: input, shape index: {}]   ;;  %s1025_s2 = inlined_call_operand.hbm [shape: f32[2,1,2,4,128], index: 2, kind: output, shape index: {}]  }
   0x1   :  { %9 = vsyncpa [#allocation3 + $0x1], 0 }
   0x2   :  { %10 = vsyncpa [#allocation6], 0 }
   0x3   :  { %12 = vsyncpa [#allocation6 + $0x1], 0 }
   0x4   :  { %13 = vsyncpa [#allocation4], 0 }
   0x5   :  { %15 = vsyncpa [#allocation4 + $0x1], 0  ;;  %s780_s9 = smov 0   ;;  %s782_s10 = smov 0  }
   0x6   :  { %s784_s11 = smov 0   ;;  %s786_s12 = smov 0  }
   0x7   :  { %s788_s13 = smov 0   ;;  %s790_s14 = smov 0  }
   0x8 LB: > { %s501_s15 = sadd.s32 4294967295, %s755_s14   ;;  %s502_s16 = sadd.s32 4294967294, %s755_s14   ;;  %s755_s14 = sphi %s790_s14, %s21_s14   ;;  %s751_s13 = sphi %s788_s13, %s1044_s13   ;;  %s747_s12 = sphi %s786_s12, %s1043_s12   ;;  %s743_s11 = sphi %s784_s11, %s1042_s11   ;;  %s739_s10 = sphi %s782_s10, %s1041_s10   ;;  %s735_s9 = sphi %s780_s9, %s1040_s9  }
   0x9   : > { %s40_s17 = sadd.s32 1, %s751_s13  ;;  %s51_s18 = sadd.s32 1, %s743_s11 }
   0xa   : > { %p42_p0 = scmp.ge.s32.totalorder %s40_s17, 2  ;;  %p58_p1 = scmp.ne.s32.totalorder %s743_s11, %s739_s10 }
   0xb   : > { %p59_p2 = scmp.eq.s32.totalorder %s755_s14, 0  ;;  %p64_p3 = scmp.ne.s32.totalorder %s739_s10, %s735_s9 }
   0xc   : > { %s1046_s17 = smov (%p42_p0, %s40_s17), 0  ;;  %p65_p5 = scmp.eq.s32.totalorder %s501_s15, 0 }
   0xd   : > { %p821_p4 = por %p59_p2, %p58_p1  ;;  %s46_s20 = ssub.s32 %s751_s13, %s1046_s17 }
   0xe   : > { %p120_p6 = scmp.eq.s32.totalorder %s501_s15, 1  ;;  %p49_p7 = scmp.eq.s32.totalorder %s46_s20, 0 }
   0xf   : > { %p827_p8 = por %p65_p5, %p64_p3  ;;  %p126_p10 = scmp.eq.s32.totalorder %s502_s16, 1 }
  0x10   : > { %p831_p9 = por %p120_p6, %p58_p1  ;;  %p544_p13 = scmp.lt.s32.totalorder %s755_s14, 2 }
  0x11   : > { %s1029_s21 = scalar_select %p827_p8, 1, 0 }
  0x12   : > { %s1030_s22 = scalar_select %p831_p9, 1, 0 }
  0x13   : > { %s836_s23 = scalar_select %p49_p7, %s743_s11, %s51_s18  }
  0x14   : > { %p838_p11 = por %p126_p10, %p64_p3  ;;  %s845_s25 = sand.u32 1, %s743_s11  }
  0x15   : > { %s505_s26 = sshll.u32 %s845_s25, 3  ;;  %s525_s27 = sshll.u32 %s751_s13, 7 }
  0x16   : > { %s1031_s24 = scalar_select %p838_p11, 1, 0 }
  0x17   : > { %s852_s30 = scalar_lea.hbm %s1023_s0, %s525_s27  ;;  %s150_s3 = scalar_lea.vmem [#allocation2], %s505_s26 }
  0x18   : > { %s159_s4 = sshll.u32 %s150_s3, 4  ;;  %p858_p0 = pnand %p544_p13, %p821_p4  ;;  %s854_s4 = int_to_ptr.vmem [resolvable:$true] %s159_s4 }
  0x19   : > { %s147_s6 = scalar_lea.sflag [#allocation3], %s845_s25  ;;  %s609_s7 = scalar_lea.hbm %s852_s30, 128 }
  0x1a   : > { %p610_p2 = scmp.ne.s32.totalorder %s852_s30, %s609_s7  ;;  %p611_p3 = pneg %p858_p0 }
  0x1b   : > { %s614_s16 = scalar_lea.hbm %s1023_s0, 256  ;;  %p615_p4 = scmp.lt.u32.totalorder %s852_s30, %s1023_s0 }
  0x1c   : > { %p612_p5 = pnand %p611_p3, %p610_p2  ;;  %p616_p7 = scmp.lt.u32.totalorder %s614_s16, %s609_s7 }
  0x1d   : > { %p618_p13 = scmp.lt.u32.totalorder %s609_s7, %s852_s30 }
  0x1e   : > { %p613_p6 = pneg %p612_p5  ;;  %p617_p10 = por %p616_p7, %p615_p4 }
  0x20   : > { %p619_p12 = por %p618_p13, %p617_p10 }
  0x22   : > { %p620_p1 = pnand %p619_p12, %p613_p6 }
  0x24   : > { %623 = shalt.err (!%p620_p1)
}
  0x25   : > { %s624_s20 = scalar_lea.vmem %s854_s4, 128  ;;  %s757_s26 = smov [#allocation2]  }
  0x26   : > { %p625_p2 = scmp.ne.s32.totalorder %s854_s4, %s624_s20  ;;  %s629_s27 = sshll.u32 %s757_s26, 4  ;;  %s630_s27 = int_to_ptr.vmem [resolvable:$false] %s629_s27 }
  0x27   : > { %s631_s28 = scalar_lea.vmem %s630_s27, 256  ;;  %p632_p9 = scmp.lt.s32.totalorder %s854_s4, %s630_s27 }
  0x28   : > { %p627_p5 = pnand %p625_p2, %p611_p3  ;;  %p633_p4 = scmp.lt.s32.totalorder %s631_s28, %s624_s20 }
  0x2a   : > { %p628_p11 = pneg %p627_p5  ;;  %p634_p7 = por %p633_p4, %p632_p9 }
  0x2c   : > { %p635_p10 = pnand %p634_p7, %p628_p11 }
  0x2e   : > { %638 = shalt.err (!%p635_p10)
}
  0x2f   : > { %s758_s29 = smov 32   ;;  %s759_s3 = smov 2  }
  0x30   : > { %536 = dma.hbm_to_vmem [thread:$0]  (!%p858_p0), %s852_s30, 128, %s854_s4, %s147_s6, %s758_s29, %s758_s29, %s759_s3  }
  0x31   : > { %p187_p12 = scmp.lt.s32.totalorder %s755_s14, 3  ;;  %s508_s7 = sshll.u32 %s845_s25, 1 }
  0x32   : > { %s509_s8 = sshll.u32 %s751_s13, 5  ;;  %p1033_p9 = scmp.ge.s32.totalorder %s755_s14, 1 }
  0x33   : > { %s903_s19 = scalar_lea.hbm %s1024_s1, %s509_s8  ;;  %s173_s20 = scalar_lea.vmem [#allocation5], %s508_s7 }
  0x34   : > { %p896_p11 = pnand %p1033_p9, %p187_p12  ;;  %s182_s26 = sshll.u32 %s173_s20, 4  ;;  %s183_s26 = int_to_ptr.vmem [resolvable:$true] %s182_s26 }
  0x35   : > { %s170_s30 = scalar_lea.sflag [#allocation6], %s845_s25  ;;  %s639_s4 = scalar_lea.hbm %s903_s19, 32 }
  0x36   : > { %s1034_s15 = scalar_select %p896_p11, 1, 0 }
  0x37   : > { %p640_p1 = scmp.ne.s32.totalorder %s903_s19, %s639_s4  ;;  %s644_s28 = scalar_lea.hbm %s1024_s1, 64 }
  0x38   : > { %p645_p2 = scmp.lt.u32.totalorder %s903_s19, %s1024_s1  ;;  %p646_p5 = scmp.lt.u32.totalorder %s644_s28, %s639_s4 }
  0x39   : > { %p642_p6 = pnand %p640_p1, %p611_p3  ;;  %p648_p7 = scmp.lt.u32.totalorder %s639_s4, %s903_s19 }
  0x3a   : > { %p647_p4 = por %p646_p5, %p645_p2 }
  0x3b   : > { %p643_p13 = pneg %p642_p6 }
  0x3c   : > { %p649_p10 = por %p648_p7, %p647_p4 }
  0x3e   : > { %p650_p12 = pnand %p649_p10, %p643_p13 }
  0x40   : > { %653 = shalt.err (!%p650_p12)
}
  0x41   : > { %s654_s25 = scalar_lea.vmem %s183_s26, 32  ;;  %s760_s7 = smov [#allocation5]  }
  0x42   : > { %p655_p9 = scmp.ne.s32.totalorder %s183_s26, %s654_s25  ;;  %s659_s8 = sshll.u32 %s760_s7, 4  ;;  %s660_s8 = int_to_ptr.vmem [resolvable:$false] %s659_s8 }
  0x43   : > { %s661_s16 = scalar_lea.vmem %s660_s8, 64  ;;  %p662_p8 = scmp.lt.s32.totalorder %s183_s26, %s660_s8 }
  0x44   : > { %p657_p1 = pnand %p655_p9, %p611_p3  ;;  %p663_p11 = scmp.lt.s32.totalorder %s661_s16, %s654_s25 }
  0x46   : > { %p658_p6 = pneg %p657_p1  ;;  %p664_p2 = por %p663_p11, %p662_p8 }
  0x48   : > { %p665_p5 = pnand %p664_p2, %p658_p6 }
  0x4a   : > { %668 = shalt.err (!%p665_p5)
}
  0x4b   : > { %539 = dma.hbm_to_vmem [thread:$0]  (!%p858_p0), %s903_s19, 32, %s183_s26, %s170_s30  }
  0x4c   : > { %p1035_p13 = scmp.ne.s32.totalorder %s1034_s15, 0 }
  0x4d   : > { %s928_s18 = sand.u32 (!%p1035_p13), 1, %s739_s10   ;;  %p1036_p3 = scmp.ne.s32.totalorder (!%p1035_p13), %s1029_s21, 0 }
  0x4e   : > { %191 = sbr.rel (%p1035_p13) target bundleno = 178 (0xb2), region = 28  ;;  %s511_s20 = sshll.u32 (!%p1035_p13), %s928_s18, 3 }
  0x4f   : > { %s194_s4 = scalar_lea.sflag (!%p1035_p13), [#allocation3], %s928_s18  ;;  %s197_s6 = scalar_lea.vmem (!%p1035_p13), [#allocation2], %s511_s20 }
  0x55   : > { %722 = dma.done.wait (%p1036_p3), %s194_s4, 128  }
  0x56   : > { %724 = vsyncadd (%p1036_p3), %s194_s4, 4294967168  ;;  %s512_s5 = sshll.u32 %s928_s18, 1  ;;  %s203_s15 = scalar_lea.sflag [#allocation6], %s928_s18 }
  0x57   : > { %s938_s19 = scalar_lea.vmem [#allocation5], %s512_s5 }
  0x58   : > { %726 = dma.done.wait (%p1036_p3), %s203_s15, 32  }
  0x59   : > { %728 = vsyncadd (%p1036_p3), %s203_s15, 4294967264  ;;  %s944_s26 = scalar_lea.vmem [#allocation7], %s511_s20  ;;  %v761_v0 = vmov 0.0   ;;  %v244_v1 = vld [vmem:[%s197_s6] sm:$0x3]  ;;  %vm279_vm9 = vcmask 1041408  }
  0x5a   : > { %238 = vst [vmem:[%s944_s26] sm:$0xf] %v761_v0  ;;  %239 = vst [vmem:[%s944_s26 + $0x4] sm:$0xf] %v761_v0  ;;  %v515_v2 = vld [vmem:[%s197_s6 + $0x2] sm:$0x3]  ;;  %vm356_vm10 = vcmask 1040384  }
  0x5b   : > { %v516_v3 = vld [vmem:[%s197_s6 + $0x4] sm:$0x3]  ;;  %v251_v4 = vmax.f32 %v244_v1, %v515_v2  ;;  %v517_v5 = vld [vmem:[%s197_s6 + $0x6] sm:$0x3]  ;;  %v240_v23 = vld [vmem:[%s938_s19] sm:$0x3] }
  0x5c   : > { %vm275_vm0 = vcmp.eq.s32.totalorder %v240_v23, 0  ;;  %vm296_vm1 = vcmp.eq.s32.totalorder %v240_v23, 1  ;;  %vm241_vm2 = vcmp.ne.s32.totalorder %v240_v23, 4294967295  ;;  %vm316_vm3 = vcmp.eq.s32.totalorder %v240_v23, 2  ;;  %s526_s21 = sshll.u32 %s747_s12, 7  ;;  %s386_s30 = sshll.u32 %s944_s26, 4  ;;  %s973_s30 = int_to_ptr.vmem [resolvable:$true] %s386_s30 }
  0x5d   : > { %v252_v6 = vmax.f32 %v251_v4, %v516_v3  ;;  %vm276_vm4 = vmand %vm241_vm2, %vm275_vm0  ;;  %vm336_vm5 = vcmp.eq.s32.totalorder %v240_v23, 3  ;;  %v514_v27 = vsel %vm241_vm2, 1.0, %v761_v0  ;;  %vm359_vm11 = vcmask 1042432   ;;  %s971_s29 = scalar_lea.hbm %s1025_s2, %s526_s21  ;;  %s371_s12 = scalar_lea.sflag [#allocation4], %s928_s18 }
  0x5e   : > { %vm297_vm6 = vmand %vm241_vm2, %vm296_vm1  ;;  %v277_v30 = vsel %vm276_vm4, 1.0, %v761_v0  ;;  %s669_s3 = scalar_lea.vmem %s973_s30, 128  ;;  %p1037_p0 = scmp.ne.s32.totalorder %s1030_s22, 0 }
  0x5f   : > { %v253_v7 = vmax.f32 %v252_v6, %v517_v5  ;;  %vm317_vm7 = vmand %vm241_vm2, %vm316_vm3  ;;  %v298_v31 = vsel %vm297_vm6, 1.0, %v761_v0  ;;  %p670_p8 = scmp.ne.s32.totalorder %s973_s30, %s669_s3  ;;  %s762_s25 = smov [#allocation7]  }
  0x60   : > { %vm337_vm8 = vmand %vm241_vm2, %vm336_vm5  ;;  %v318_v32 = vsel %vm317_vm7, 1.0, %v761_v0  ;;  %s673_s7 = sshll.u32 %s762_s25, 4  ;;  %s674_s7 = int_to_ptr.vmem [resolvable:$false] %s673_s7 }
  0x61   : > { %v254_v8 = vsub.f32 %v244_v1, %v253_v7  ;;  %v257_v9 = vsub.f32 %v515_v2, %v253_v7  ;;  %v260_v10 = vsub.f32 %v516_v3, %v253_v7  ;;  %v263_v11 = vsub.f32 %v517_v5, %v253_v7  ;;  %p671_p11 = pnand %p670_p8, %p1037_p0  ;;  %s675_s8 = scalar_lea.vmem %s674_s7, 256 }
  0x62   : > { %v338_v33 = vsel %vm337_vm8, 1.0, %v761_v0  ;;  %p676_p7 = scmp.lt.s32.totalorder %s973_s30, %s674_s7  ;;  %p677_p10 = scmp.lt.s32.totalorder %s675_s8, %s669_s3 }
  0x63   : > { %v255_v12 = vmul.f32 1.442695, %v254_v8  ;;  %v258_v13 = vmul.f32 1.442695, %v257_v9  ;;  %v261_v14 = vmul.f32 1.442695, %v260_v10  ;;  %p672_p4 = pneg %p671_p11 }
  0x64   : > { %v264_v15 = vmul.f32 1.442695, %v263_v11  ;;  %p678_p12 = por %p677_p10, %p676_p7 }
  0x65   : > { %599 = vpow2.f32 %v255_v12 }
  0x66   : > { %601 = vpow2.f32 %v258_v13  ;;  %p679_p9 = pnand %p678_p12, %p672_p4 }
  0x67   : > { %603 = vpow2.f32 %v261_v14 }
  0x68   : > { %605 = vpow2.f32 %v264_v15 }
  0x6f   : > { %v600_v16 = vpop.eup %599 }
  0x70   : > { %v602_v17 = vpop.eup %601 }
  0x71   : > { %v604_v18 = vpop.eup %603  ;;  %v266_v19 = vadd.f32 %v602_v17, %v600_v16 }
  0x72   : > { %v606_v20 = vpop.eup %605 }
  0x73   : > { %v267_v21 = vadd.f32 %v604_v18, %v266_v19 }
  0x75   : > { %v268_v22 = vadd.f32 %v606_v20, %v267_v21 }
  0x77   : > { %607 = vrcp.f32 %v268_v22 }
  0x81   : > { %v608_v24 = vpop.eup %607 }
  0x82   : > { %v270_v25 = vmul.f32 %v608_v24, %v268_v22 }
  0x84   : > { %v271_v26 = vsub.f32 2.0, %v270_v25 }
  0x86   : > { %v272_v28 = vmul.f32 %v608_v24, %v271_v26 }
  0x88   : > { %v273_v29 = vmul.f32 %v514_v27, %v272_v28 }
  0x8a   : > { %v274_v34 = vmul.f32 %v600_v16, %v273_v29  ;;  %v295_v35 = vmul.f32 %v602_v17, %v273_v29  ;;  %v315_v36 = vmul.f32 %v604_v18, %v273_v29  ;;  %v335_v37 = vmul.f32 %v606_v20, %v273_v29 }
  0x8c   : > { %v278_v38 = vmul.f32 %v277_v30, %v274_v34  ;;  %v299_v39 = vmul.f32 %v298_v31, %v295_v35  ;;  %v319_v40 = vmul.f32 %v318_v32, %v315_v36  ;;  %v339_v41 = vmul.f32 %v338_v33, %v335_v37 }
  0x8d   : > { %v287_v42 = vadd.f32 %v277_v30, %v274_v34  ;;  %v307_v43 = vadd.f32 %v298_v31, %v295_v35  ;;  %v327_v44 = vadd.f32 %v318_v32, %v315_v36  ;;  %v347_v45 = vadd.f32 %v338_v33, %v335_v37  ;;  %v355_v34 = vld [vmem:[%s944_s26] sm:$0xf] }
  0x8e   : > { %v280_v46 = vsel %vm279_vm9, %v278_v38, 0.0  ;;  %v300_v47 = vsel %vm279_vm9, %v299_v39, 0.0  ;;  %v320_v48 = vsel %vm279_vm9, %v319_v40, 0.0  ;;  %v340_v49 = vsel %vm279_vm9, %v339_v41, 0.0 }
  0x8f   : > { %v281_v50 = vrot.slane %v280_v46, 4  ;;  %v301_v51 = vrot.slane %v300_v47, 4  ;;  %v321_v52 = vrot.slane %v320_v48, 4  ;;  %v341_v53 = vrot.slane %v340_v49, 4 }
  0x90   : > { %v288_v54 = vsel %vm279_vm9, %v287_v42, 0.0  ;;  %v308_v55 = vsel %vm279_vm9, %v307_v43, 0.0  ;;  %v328_v56 = vsel %vm279_vm9, %v327_v44, 0.0  ;;  %v348_v57 = vsel %vm279_vm9, %v347_v45, 0.0  ;;  %v518_v43 = vld [vmem:[%s944_s26 + $0x4] sm:$0xf] }
  0x91   : > { %v282_v58 = vadd.f32 %v281_v50, %v280_v46  ;;  %v302_v59 = vadd.f32 %v301_v51, %v300_v47  ;;  %v322_v60 = vadd.f32 %v321_v52, %v320_v48  ;;  %v342_v61 = vadd.f32 %v341_v53, %v340_v49 }
  0x92   : > { %v289_v62 = vrot.slane %v288_v54, 4  ;;  %v309_v63 = vrot.slane %v308_v55, 4  ;;  %v329_v0 = vrot.slane %v328_v56, 4  ;;  %v349_v1 = vrot.slane %v348_v57, 4 }
  0x93   : > { %v283_v2 = vrot.slane %v282_v58, 2  ;;  %v303_v3 = vrot.slane %v302_v59, 2  ;;  %v323_v4 = vrot.slane %v322_v60, 2  ;;  %v343_v5 = vrot.slane %v342_v61, 2 }
  0x94   : > { %v290_v6 = vadd.f32 %v289_v62, %v288_v54  ;;  %v310_v7 = vadd.f32 %v309_v63, %v308_v55  ;;  %v330_v8 = vadd.f32 %v329_v0, %v328_v56  ;;  %v350_v9 = vadd.f32 %v349_v1, %v348_v57 }
  0x95   : > { %v284_v10 = vadd.f32 %v283_v2, %v282_v58  ;;  %v304_v11 = vadd.f32 %v303_v3, %v302_v59  ;;  %v324_v12 = vadd.f32 %v323_v4, %v322_v60  ;;  %v344_v13 = vadd.f32 %v343_v5, %v342_v61 }
  0x96   : > { %v291_v14 = vrot.slane %v290_v6, 2  ;;  %v311_v15 = vrot.slane %v310_v7, 2  ;;  %v331_v16 = vrot.slane %v330_v8, 2  ;;  %v351_v17 = vrot.slane %v350_v9, 2 }
  0x97   : > { %v285_v18 = vrot.slane %v284_v10, 1  ;;  %v305_v19 = vrot.slane %v304_v11, 1  ;;  %v325_v20 = vrot.slane %v324_v12, 1  ;;  %v345_v21 = vrot.slane %v344_v13, 1 }
  0x98   : > { %v292_v22 = vadd.f32 %v291_v14, %v290_v6  ;;  %v312_v23 = vadd.f32 %v311_v15, %v310_v7  ;;  %v332_v24 = vadd.f32 %v331_v16, %v330_v8  ;;  %v352_v25 = vadd.f32 %v351_v17, %v350_v9 }
  0x99   : > { %v286_v26 = vadd.f32 %v285_v18, %v284_v10  ;;  %v306_v27 = vadd.f32 %v305_v19, %v304_v11  ;;  %v326_v28 = vadd.f32 %v325_v20, %v324_v12  ;;  %v346_v29 = vadd.f32 %v345_v21, %v344_v13 }
  0x9a   : > { %v293_v30 = vrot.slane %v292_v22, 1  ;;  %v313_v31 = vrot.slane %v312_v23, 1  ;;  %v333_v32 = vrot.slane %v332_v24, 1  ;;  %v353_v33 = vrot.slane %v352_v25, 1 }
  0x9b   : > { %v357_v35 = vsel %vm356_vm10, %v286_v26, %v306_v27 }
  0x9c   : > { %v358_v36 = vsel %vm279_vm9, %v357_v35, %v326_v28  ;;  %v294_v37 = vadd.f32 %v293_v30, %v292_v22  ;;  %v314_v38 = vadd.f32 %v313_v31, %v312_v23  ;;  %v334_v39 = vadd.f32 %v333_v32, %v332_v24 }
  0x9d   : > { %v360_v40 = vsel %vm359_vm11, %v358_v36, %v346_v29  ;;  %v354_v41 = vadd.f32 %v353_v33, %v352_v25 }
  0x9e   : > { %v361_v42 = vadd.f32 %v360_v40, %v355_v34  ;;  %v365_v44 = vsel %vm356_vm10, %v294_v37, %v314_v38 }
  0x9f   : > { %v366_v45 = vsel %vm279_vm9, %v365_v44, %v334_v39 }
  0xa0   : > { %362 = vst [vmem:[%s944_s26] sm:$0xf] %v361_v42  ;;  %v367_v46 = vsel %vm359_vm11, %v366_v45, %v354_v41 }
  0xa1   : > { %v368_v47 = vadd.f32 %v518_v43, %v367_v46 }
  0xa3   : > { %519 = vst [vmem:[%s944_s26 + $0x4] sm:$0xf] %v368_v47 }
  0xa4   : > { %682 = shalt.err (!%p679_p9)
}
  0xa5   : > { %s683_s16 = scalar_lea.hbm %s971_s29, 128  ;;  %s687_s6 = scalar_lea.hbm %s1025_s2, 256 }
  0xa6   : > { %p684_p1 = scmp.ne.s32.totalorder %s971_s29, %s683_s16  ;;  %p688_p5 = scmp.lt.u32.totalorder %s971_s29, %s1025_s2 }
  0xa7   : > { %p689_p13 = scmp.lt.u32.totalorder %s687_s6, %s683_s16  ;;  %p691_p8 = scmp.lt.u32.totalorder %s683_s16, %s971_s29 }
  0xa8   : > { %p685_p6 = pnand %p684_p1, %p1037_p0 }
  0xa9   : > { %p690_p3 = por %p689_p13, %p688_p5 }
  0xaa   : > { %p686_p2 = pneg %p685_p6 }
  0xab   : > { %p692_p11 = por %p691_p8, %p690_p3 }
  0xad   : > { %p693_p4 = pnand %p692_p11, %p686_p2 }
  0xaf   : > { %696 = shalt.err (!%p693_p4)
}
  0xb0   : > { %s763_s19 = smov 64   ;;  %s764_s26 = smov 4  }
  0xb1   : > { %531 = dma.vmem_to_hbm [thread:$0]  (%p1037_p0), %s973_s30, 128, %s971_s29, %s371_s12, %s763_s19, %s763_s19, %s764_s26  }
  0xb2 PF: > { %s401_s21 = sand.u32 1, %s735_s9   ;;  %p1038_p7 = scmp.ne.s32.totalorder %s1031_s24, 0 }
  0xb3   : > { %p1039_p10 = scmp.ge.s32.totalorder %s755_s14, 2  ;;  %s402_s27 = scalar_lea.sflag [#allocation4], %s401_s21 }
  0xb5   : > { %p541_p12 = pnand %p1039_p10, %p1038_p7 }
  0xb7   : > { %730 = dma.done.wait (!%p541_p12), %s402_s27, 128  }
  0xb8   : > { %732 = vsyncadd (!%p541_p12), %s402_s27, 4294967168  ;;  %s21_s14 = sadd.s32 1, %s755_s14   ;;  %s1040_s9 = smov %s739_s10 }
  0xb9   : > { %p18_p9 = scmp.ge.s32.totalorder %s21_s14, 4   ;;  %s1041_s10 = smov %s743_s11 }
  0xba   : > { %s1042_s11 = smov %s836_s23  ;;  %s1043_s12 = smov %s751_s13 }
  0xbb   : > { %s1044_s13 = smov %s1046_s17  ;;  %20 = sbr.rel (!%p18_p9) target bundleno = 8 (0x8), region = 94 }
  0xc2   :  { %407 = vsyncpa [#allocation3], 1 }
  0xc3   :  { %409 = vsyncpa [#allocation3 + $0x1], 1 }
  0xc4   :  { %410 = vsyncpa [#allocation6], 1 }
  0xc5   :  { %412 = vsyncpa [#allocation6 + $0x1], 1 }
  0xc6   :  { %413 = vsyncpa [#allocation4], 1 }
  0xc7   :  { %415 = vsyncpa [#allocation4 + $0x1], 1 }

</bundles_post_ra>
